<compile_context>
chip_gen: v7x
topology: tpu7x:2x2x1
jax: 0.10.0
libtpu: 0.0.40
codegen_flags: <defaults>
</compile_context>

<pallas_src>
import jax
import jax.numpy as jnp
from jax.experimental import pallas as pl
from jax.experimental.pallas import tpu as pltpu

LANES = 128
SUBLANES = 8
_SMALL_PATH_MAX_ROWS = 64        # V <= 8192 -> single-DMA fast path
_DEFAULT_MAX_BLOCK_ROWS = 1024   # 512 KiB / input / block in the streaming path


def _round_up(x, m):
    return ((x + m - 1) // m) * m


def _pad_and_tile(x, padded_rows):
    """Zero-pad a flat vector and reshape to a lane-dense (padded_rows, 128) f32 tile."""
    x = jnp.asarray(x, jnp.float32).reshape(-1)
    pad = padded_rows * LANES - x.shape[0]
    if pad:
        x = jnp.pad(x, (0, pad))
    return x.reshape(padded_rows, LANES)


# ----------------------------------------------------------------------------
# Small-V fast path: one stacked (3, rows, 128) input, one DMA, one grid step.
# ----------------------------------------------------------------------------
def _cosine_small_kernel(stk_ref, out_ref):
    x = stk_ref[0]          # (rows, 128)
    y = stk_ref[1]
    w = stk_ref[2]
    wsq = w * w             # factor the weight: one fewer vmul per product
    s11 = jnp.sum(x * x * wsq)
    s12 = jnp.sum(x * y * wsq)
    s22 = jnp.sum(y * y * wsq)
    out_ref[0, 0] = s12 * jax.lax.rsqrt(s11) * jax.lax.rsqrt(s22)


# ----------------------------------------------------------------------------
# Streaming path for large V: VPU-fold into a (3,8,128) VMEM accumulator per
# step; single XLU reduce + rsqrt in the finalize.
# ----------------------------------------------------------------------------
def _cosine_stream_kernel(w1_ref, w2_ref, wt_ref, out_ref, acc_ref):
    step = pl.program_id(0)

    @pl.when(step == 0)
    def _init():
        acc_ref[...] = jnp.zeros_like(acc_ref)

    x = w1_ref[...]          # (block_rows, 128)
    y = w2_ref[...]
    w = wt_ref[...]
    wsq = w * w

    rows = w1_ref.shape[0]
    n = rows // SUBLANES
    # Elementwise (VALU) folds over the leading tile axis: no XLU work per step,
    # hides entirely under the HBM DMA.
    acc_ref[0, :, :] += jnp.sum((x * x * wsq).reshape(n, SUBLANES, LANES), axis=0)
    acc_ref[1, :, :] += jnp.sum((x * y * wsq).reshape(n, SUBLANES, LANES), axis=0)
    acc_ref[2, :, :] += jnp.sum((y * y * wsq).reshape(n, SUBLANES, LANES), axis=0)

    @pl.when(step == pl.num_programs(0) - 1)
    def _finalize():
        s11 = jnp.sum(acc_ref[0, :, :])
        s12 = jnp.sum(acc_ref[1, :, :])
        s22 = jnp.sum(acc_ref[2, :, :])
        out_ref[0, 0] = s12 * jax.lax.rsqrt(s11) * jax.lax.rsqrt(s22)


def word_similarity(word1_vector, word2_vector, weight,
                    *, max_block_rows=_DEFAULT_MAX_BLOCK_ROWS):
    """Pallas implementation of WordSimilarityModel.forward.

    word1_vector, word2_vector, weight: f32 arrays of shape (V,).
    Returns a scalar f32 (cosine similarity of the weighted vectors).
    """
    v = int(word1_vector.shape[0])
    rows = -(-v // LANES)                                  # ceil(V / 128)
    max_block_rows = max(SUBLANES, _round_up(int(max_block_rows), SUBLANES))

    out_spec = pl.BlockSpec(memory_space=pltpu.MemorySpace.SMEM)
    cparams = pltpu.CompilerParams(dimension_semantics=("arbitrary",))

    if rows <= _SMALL_PATH_MAX_ROWS and rows <= max_block_rows:
        # --- fast path: single DMA of a stacked (3, rows, 128) slab ---------
        stk = jnp.stack([_pad_and_tile(word1_vector, rows),
                         _pad_and_tile(word2_vector, rows),
                         _pad_and_tile(weight, rows)], axis=0)
        out = pl.pallas_call(
            _cosine_small_kernel,
            out_shape=jax.ShapeDtypeStruct((1, 1), jnp.float32),
            grid_spec=pltpu.PrefetchScalarGridSpec(
                num_scalar_prefetch=0,
                grid=(1,),
                # block == full array dims (legal even when rows % 8 != 0)
                in_specs=[pl.BlockSpec((3, rows, LANES), lambda i: (0, 0, 0))],
                out_specs=out_spec,
            ),
            compiler_params=cparams,
        )(stk)
        return out[0, 0]

    # --- streaming path: adaptive block size, minimal zero-padding ----------
    rows8 = _round_up(rows, SUBLANES)
    num_blocks = -(-rows8 // max_block_rows)
    block_rows = _round_up(-(-rows8 // num_blocks), SUBLANES)
    padded_rows = block_rows * num_blocks

    w1 = _pad_and_tile(word1_vector, padded_rows)
    w2 = _pad_and_tile(word2_vector, padded_rows)
    wt = _pad_and_tile(weight, padded_rows)

    spec = pl.BlockSpec((block_rows, LANES), lambda i: (i, 0))
    out = pl.pallas_call(
        _cosine_stream_kernel,
        out_shape=jax.ShapeDtypeStruct((1, 1), jnp.float32),
        grid_spec=pltpu.PrefetchScalarGridSpec(
            num_scalar_prefetch=0,
            grid=(num_blocks,),
            in_specs=[spec, spec, spec],
            out_specs=out_spec,
            scratch_shapes=[pltpu.VMEM((3, SUBLANES, LANES), jnp.float32)],
        ),
        compiler_params=cparams,
    )(w1, w2, wt)
    return out[0, 0]


def _reference(w1, w2, wt):
    a = jnp.asarray(w1, jnp.float32) * jnp.asarray(wt, jnp.float32)
    b = jnp.asarray(w2, jnp.float32) * jnp.asarray(wt, jnp.float32)
    return jnp.sum(a * b) / (jnp.linalg.norm(a) * jnp.linalg.norm(b))


if __name__ == "__main__":
    key = jax.random.PRNGKey(0)
    k1, k2, k3, k4 = jax.random.split(key, 4)

    # 1) Production-like shape: vector_size = 128 (weight = ones, matching the
    #    nn.Parameter(torch.ones(vector_size)) init).  Exercises the fast path.
    V = 128
    word1 = jax.random.normal(k1, (V,), dtype=jnp.float32)
    word2 = jax.random.normal(k2, (V,), dtype=jnp.float32)
    weight = jnp.ones((V,), dtype=jnp.float32)
    r1 = word_similarity(word1, word2, weight)
    jax.block_until_ready(r1)
    ref1 = _reference(word1, word2, weight)
    assert jnp.allclose(r1, ref1, atol=1e-5, rtol=1e-5), (r1, ref1)

    # 2) V not a multiple of 128: exercises zero-padding on the fast path.
    V2 = 300
    w1b = jax.random.normal(k3, (V2,), dtype=jnp.float32)
    w2b = jax.random.normal(k4, (V2,), dtype=jnp.float32)
    wtb = 0.5 + jax.random.uniform(k1, (V2,), dtype=jnp.float32)
    r2 = word_similarity(w1b, w2b, wtb)
    jax.block_until_ready(r2)
    ref2 = _reference(w1b, w2b, wtb)
    assert jnp.allclose(r2, ref2, atol=1e-5, rtol=1e-5), (r2, ref2)

    # 3) Streaming path with a multi-step grid (small max_block_rows to keep the
    #    test tiny): rows=72 -> 5 blocks of 16 rows, VMEM accumulator carried
    #    across grid steps.
    V3 = 9216
    w1c = jax.random.normal(k2, (V3,), dtype=jnp.float32)
    w2c = jax.random.normal(k3, (V3,), dtype=jnp.float32)
    wtc = 0.5 + jax.random.uniform(k4, (V3,), dtype=jnp.float32)
    r3 = word_similarity(w1c, w2c, wtc, max_block_rows=16)
    jax.block_until_ready(r3)
    ref3 = _reference(w1c, w2c, wtc)
    assert jnp.allclose(r3, ref3, atol=1e-5, rtol=1e-5), (r3, ref3)

    print("KERNEL_OK")
</pallas_src>

<mosaic_0001>
module attributes {stable_mosaic.version = 11 : i64} {
  func.func @_cosine_small_kernel(%arg0: i32, %arg1: memref<3x1x128xf32, #tpu.memory_space<vmem>>, %arg2: memref<1x1xf32, #tpu.memory_space<smem>>) attributes {dimension_semantics = [#tpu.dimension_semantics<arbitrary>], iteration_bounds = array<i64: 1>, scalar_prefetch = 0 : i64, scratch_operands = 0 : i64, tpu.core_type = #tpu.core_type<tc>, window_params = [{pipeline_mode = #tpu.pipeline_mode<synchronous>, transform_indices = @transform_0, window_bounds = array<i64: 3, 1, 128>}, {transform_indices = @transform_1, window_bounds = array<i64: 1, 1>}]} {
    %c0 = arith.constant 0 : index
    %c0_0 = arith.constant 0 : index
    %c0_1 = arith.constant 0 : index
    %0 = vector.load %arg1[%c0, %c0_0, %c0_1] : memref<3x1x128xf32, #tpu.memory_space<vmem>>, vector<1x1x128xf32>
    %1 = vector.shape_cast %0 : vector<1x1x128xf32> to vector<1x128xf32>
    %c1 = arith.constant 1 : index
    %c0_2 = arith.constant 0 : index
    %c0_3 = arith.constant 0 : index
    %2 = vector.load %arg1[%c1, %c0_2, %c0_3] : memref<3x1x128xf32, #tpu.memory_space<vmem>>, vector<1x1x128xf32>
    %3 = vector.shape_cast %2 : vector<1x1x128xf32> to vector<1x128xf32>
    %c2 = arith.constant 2 : index
    %c0_4 = arith.constant 0 : index
    %c0_5 = arith.constant 0 : index
    %4 = vector.load %arg1[%c2, %c0_4, %c0_5] : memref<3x1x128xf32, #tpu.memory_space<vmem>>, vector<1x1x128xf32>
    %5 = vector.shape_cast %4 : vector<1x1x128xf32> to vector<1x128xf32>
    %6 = arith.mulf %5, %5 : vector<1x128xf32>
    %7 = arith.mulf %1, %1 : vector<1x128xf32>
    %8 = arith.mulf %7, %6 : vector<1x128xf32>
    %9 = vector.shape_cast %8 : vector<1x128xf32> to vector<1x1x128xf32>
    %cst = arith.constant dense<0.000000e+00> : vector<1xf32>
    %10 = vector.multi_reduction <add>, %9, %cst [1, 2] : vector<1x1x128xf32> to vector<1xf32>
    %11 = vector.shape_cast %10 : vector<1xf32> to vector<1x1x1xf32>
    %12 = vector.extract %11[0, 0, 0] : f32 from vector<1x1x1xf32>
    %13 = arith.mulf %1, %3 : vector<1x128xf32>
    %14 = arith.mulf %13, %6 : vector<1x128xf32>
    %15 = vector.shape_cast %14 : vector<1x128xf32> to vector<1x1x128xf32>
    %cst_6 = arith.constant dense<0.000000e+00> : vector<1xf32>
    %16 = vector.multi_reduction <add>, %15, %cst_6 [1, 2] : vector<1x1x128xf32> to vector<1xf32>
    %17 = vector.shape_cast %16 : vector<1xf32> to vector<1x1x1xf32>
    %18 = vector.extract %17[0, 0, 0] : f32 from vector<1x1x1xf32>
    %19 = arith.mulf %3, %3 : vector<1x128xf32>
    %20 = arith.mulf %19, %6 : vector<1x128xf32>
    %21 = vector.shape_cast %20 : vector<1x128xf32> to vector<1x1x128xf32>
    %cst_7 = arith.constant dense<0.000000e+00> : vector<1xf32>
    %22 = vector.multi_reduction <add>, %21, %cst_7 [1, 2] : vector<1x1x128xf32> to vector<1xf32>
    %23 = vector.shape_cast %22 : vector<1xf32> to vector<1x1x1xf32>
    %24 = vector.extract %23[0, 0, 0] : f32 from vector<1x1x1xf32>
    %25 = math.rsqrt %12 : f32
    %26 = arith.mulf %18, %25 : f32
    %27 = math.rsqrt %24 : f32
    %28 = arith.mulf %26, %27 : f32
    %c0_8 = arith.constant 0 : index
    %c0_9 = arith.constant 0 : index
    %29 = memref.load %arg2[%c0_8, %c0_9] : memref<1x1xf32, #tpu.memory_space<smem>>
    memref.store %28, %arg2[%c0_8, %c0_9] : memref<1x1xf32, #tpu.memory_space<smem>>
    return
  }
  func.func @transform_0(%arg0: i32) -> (i32, i32, i32) {
    %c0_i32 = arith.constant 0 : i32
    %c0_i32_0 = arith.constant 0 : i32
    %c0_i32_1 = arith.constant 0 : i32
    %c0_i32_2 = arith.constant 0 : i32
    return %c0_i32, %c0_i32_0, %c0_i32_1 : i32, i32, i32
  }
  func.func @transform_1(%arg0: i32) -> (i32, i32) {
    %c0_i32 = arith.constant 0 : i32
    %c0_i32_0 = arith.constant 0 : i32
    %c0_i32_1 = arith.constant 0 : i32
    return %c0_i32, %c0_i32_0 : i32, i32
  }
}

</mosaic_0001>

<bundles_post_ra>
// kernel: tpu_custom_call.1
= control target key start
LH: loop header
LB: loop body
LE: loop exit
PB: predicated region body
PF: predicated region fallthrough
CT: control target
= control target key end

     0   :  { %6 = vsyncpa [#allocation3], 0  ;;  %s182_s0 = inlined_call_operand.hbm [shape: f32[3,1,128], index: 0, kind: input, shape index: {}]   ;;  %s183_s1 = inlined_call_operand.hbm [shape: f32[1,1], index: 1, kind: output, shape index: {}]  }
   0x1   :  { %7 = vsyncpa [#allocation4], 0  ;;  %s144_s6 = smov [#allocation2]   ;;  %s108_s10 = scalar_lea.hbm %s182_s0, 48 }
   0x2   :  { %s13_s7 = sshll.u32 %s144_s6, 4  ;;  %p109_p0 = scmp.ne.s32.totalorder %s182_s0, %s108_s10  ;;  %s14_s7 = int_to_ptr.vmem [resolvable:$true] %s13_s7 }
   0x3   :  { %p112_p1 = scmp.lt.u32.totalorder %s108_s10, %s182_s0 }
   0x5   :  { %p114_p2 = pnand %p112_p1, %p109_p0 }
   0x7   :  { %117 = shalt.err (!%p114_p2)
}
   0x8   :  { %s118_s15 = scalar_lea.vmem %s14_s7, 48  ;;  %s122_s16 = scalar_lea.vmem %s14_s7, 64 }
   0x9   :  { %p119_p3 = scmp.ne.s32.totalorder %s14_s7, %s118_s15  ;;  %p123_p4 = scmp.lt.s32.totalorder %s14_s7, %s14_s7 }
   0xa   :  { %p124_p5 = scmp.lt.s32.totalorder %s122_s16, %s118_s15 }
   0xc   :  { %p125_p6 = por %p124_p5, %p123_p4 }
   0xe   :  { %p126_p7 = pnand %p125_p6, %p119_p3 }
  0x10   :  { %129 = shalt.err (!%p126_p7)
}
  0x11   :  { %s145_s17 = smov 16   ;;  %s146_s18 = smov 1  }
  0x12   :  { %19 = dma.hbm_to_vmem [thread:$0]  %s182_s0, 48, %s14_s7, [#allocation3], %s145_s17, %s145_s17, %s146_s18  }
  0x13   :  { %140 = dma.done.wait [#allocation3], 48  }
  0x14   :  { %141 = vsyncadd [#allocation3], 4294967248  ;;  %v25_v0 = vld [vmem:[#allocation2 + $0x1] sm:$0x1]  ;;  %v27_v1 = vld [vmem:[#allocation2 + $0x2] sm:$0x1] }
  0x15   :  { %v23_v2 = vld [vmem:[#allocation2] sm:$0x1]  ;;  %v28_v3 = vmul.f32 %v27_v1, %v27_v1  ;;  %v54_v4 = vmul.f32 %v25_v0, %v25_v0  ;;  %vm31_vm0 = vcmask 1040384   ;;  %s130_s29 = scalar_lea.hbm %s183_s1, 16 }
  0x16   :  { %v29_v5 = vmul.f32 %v23_v2, %v23_v2  ;;  %v42_v6 = vmul.f32 %v25_v0, %v23_v2  ;;  %p131_p8 = scmp.ne.s32.totalorder %s183_s1, %s130_s29  ;;  %p134_p9 = scmp.lt.u32.totalorder %s130_s29, %s183_s1 }
  0x17   :  { %v55_v7 = vmul.f32 %v54_v4, %v28_v3 }
  0x18   :  { %v30_v8 = vmul.f32 %v29_v5, %v28_v3  ;;  %v43_v9 = vmul.f32 %v42_v6, %v28_v3  ;;  %p136_p10 = pnand %p134_p9, %p131_p8 }
  0x19   :  { %v56_v10 = vsel %vm31_vm0, %v55_v7, 0.0 }
  0x1a   :  { %v32_v11 = vsel %vm31_vm0, %v30_v8, 0.0  ;;  %57 = vadd.xlane.f32.xlu1 %v56_v10  ;;  %v44_v12 = vsel %vm31_vm0, %v43_v9, 0.0 }
  0x1b   :  { %33 = vadd.xlane.f32.xlu0 %v32_v11 }
  0x1f   :  { %45 = vadd.xlane.f32.xlu0 %v44_v12 }
  0xa7   :  { %v58_v13 = vpop.xlane.xlu1 %57 }
  0xa8   :  { %v34_v14 = vpop.xlane.xlu0 %33  ;;  %v59_v15 = vrot.slane %v58_v13, 4 }
  0xa9   :  { %v35_v16 = vrot.slane %v34_v14, 4 }
  0xaa   :  { %v60_v17 = vadd.f32 %v59_v15, %v58_v13 }
  0xab   :  { %v36_v18 = vadd.f32 %v35_v16, %v34_v14 }
  0xac   :  { %v46_v19 = vpop.xlane.xlu0 %45  ;;  %v61_v20 = vrot.slane %v60_v17, 2 }
  0xad   :  { %v37_v21 = vrot.slane %v36_v18, 2  ;;  %v47_v22 = vrot.slane %v46_v19, 4 }
  0xae   :  { %v62_v25 = vadd.f32 %v61_v20, %v60_v17 }
  0xaf   :  { %v48_v23 = vadd.f32 %v47_v22, %v46_v19  ;;  %v38_v24 = vadd.f32 %v37_v21, %v36_v18 }
  0xb0   :  { %v63_v30 = vrot.slane %v62_v25, 1 }
  0xb1   :  { %v49_v26 = vrot.slane %v48_v23, 2  ;;  %v39_v27 = vrot.slane %v38_v24, 1 }
  0xb2   :  { %v64_v33 = vadd.f32 %v63_v30, %v62_v25 }
  0xb3   :  { %v50_v28 = vadd.f32 %v49_v26, %v48_v23  ;;  %v40_v29 = vadd.f32 %v39_v27, %v38_v24 }
  0xb5   :  { %90 = vpush %v40_v29  ;;  %v51_v31 = vrot.slane %v50_v28, 1 }
  0xb7   :  { %v52_v32 = vadd.f32 %v51_v31, %v50_v28 }
  0xb9   :  { %92 = vpush %v52_v32 }
  0xba   :  { %94 = vpush %v64_v33 }
  0xe6   :  { %s91_s0 = spop %90 }
  0xe7   :  { %v66_v34 = vstv %s91_s0 }
  0xe8   :  { %104 = vrsqrt.f32 %v66_v34 }
  0xea   :  { %s93_s21 = spop %92 }
  0xeb   :  { %s95_s22 = spop %94 }
  0xec   :  { %v70_v35 = vstv %s95_s22 }
  0xed   :  { %106 = vrsqrt.f32 %v70_v35 }
  0xf2   :  { %v105_v36 = vpop.eup %104 }
  0xf3   :  { %96 = vpush %v105_v36 }
  0xf7   :  { %v107_v37 = vpop.eup %106 }
  0xf8   :  { %98 = vpush %v107_v37 }
 0x124   :  { %s97_s23 = spop %96 }
 0x125   :  { %s69_s24 = smul.f32 %s97_s23, %s93_s21 }
 0x129   :  { %s99_s25 = spop %98 }
 0x12a   :  { %s73_s26 = smul.f32 %s99_s25, %s69_s24 }
 0x12c   :  { %75 = sst [smem:[#allocation5]] %s73_s26 }
 0x12d   :  { %139 = shalt.err (!%p136_p10)
}
 0x12e   :  { %s147_s5 = smov [#allocation5]  }
 0x12f   :  { %83 = dma.smem_to_hbm %s147_s5, 16, %s183_s1, [#allocation4]  }
 0x130   :  { %142 = dma.done.wait [#allocation4], 16  }
 0x131   :  { %143 = vsyncadd [#allocation4], 4294967280 }
 0x132   :  { %87 = sfence }
 0x133   :  { %88 = vsyncpa [#allocation3], 1 }
 0x134   :  { %89 = vsyncpa [#allocation4], 1 }

</bundles_post_ra>
